<compile_context>
chip_gen: v5e
topology: v5e:2x2
jax: 0.10.0
libtpu: 0.0.40
codegen_flags: <defaults>
</compile_context>

<pallas_src>
import jax
import jax.numpy as jnp
from jax import lax
from jax.experimental import pallas as pl
from jax.experimental.pallas import tpu as pltpu


def _frozen_bn_kernel(x_ref, scale_ref, bias_ref, o_ref):
    # x_ref: (BR, BC) in x.dtype; scale/bias: (BR, 1) f32 columns that
    # broadcast across the lane axis.  Pure VPU elementwise work; HBM-bound.
    o_ref[...] = (x_ref[...] * scale_ref[...] + bias_ref[...]).astype(o_ref.dtype)


def _choose_tiles(NC, HW, itemsize, target_bytes=2 * 1024 * 1024):
    """Pick (BR, BC) so one x block is ~target_bytes and layout-legal."""
    # Sublane granularity: 8 for 32-bit, 16 for bf16/f16, 32 for int8.
    sublane = max(8, 32 // max(1, itemsize))

    # Column tile: full HW if a sublane-deep stripe fits the budget, else the
    # largest multiple of 128 that does (block last dim must be a multiple of
    # 128 or equal to the full dim).
    if HW * sublane * itemsize <= target_bytes:
        BC = HW
    else:
        BC = max(128, (target_bytes // (sublane * itemsize)) // 128 * 128)
        BC = min(BC, max(128, HW // 128 * 128)) if HW >= 128 else HW

    # Row tile: as many sublane-multiples as fit the budget given BC; if that
    # covers all rows, use the full dim (always legal regardless of NC % 8).
    rows = max(1, target_bytes // max(1, BC * itemsize))
    rows = max(sublane, (rows // sublane) * sublane)
    if rows >= NC:
        rows = NC
    return rows, BC


def frozen_batchnorm2d(x, weight, bias, running_mean, running_var, donate_x=False):
    """x: (N, C, H, W); params: (C,). Returns (N, C, H, W) in x.dtype."""
    N, C, H, W = x.shape
    NC, HW = N * C, H * W

    # Fold the frozen statistics once, in f32, on the tiny (C,) vectors.
    eps = jnp.float32(1e-05)
    w32 = weight.astype(jnp.float32)
    b32 = bias.astype(jnp.float32)
    rm32 = running_mean.astype(jnp.float32)
    rv32 = running_var.astype(jnp.float32)
    scale_c = w32 * lax.rsqrt(rv32 + eps)          # (C,)
    bias_c = b32 - rm32 * scale_c                  # (C,)

    # Expand to one f32 column per (n, c) row of the (NC, HW) slab.  These are
    # tiny (NC floats) relative to x, so the extra HBM traffic is negligible.
    scale2 = jnp.broadcast_to(scale_c[None, :], (N, C)).reshape(NC, 1)
    bias2 = jnp.broadcast_to(bias_c[None, :], (N, C)).reshape(NC, 1)

    x2 = x.reshape(NC, HW)

    itemsize = jnp.dtype(x.dtype).itemsize
    BR, BC = _choose_tiles(NC, HW, itemsize)
    grid = (pl.cdiv(NC, BR), pl.cdiv(HW, BC))

    x_spec = pl.BlockSpec((BR, BC), lambda i, j: (i, j))
    p_spec = pl.BlockSpec((BR, 1), lambda i, j: (i, 0))

    kwargs = {}
    if donate_x:
        # Optional: write the result back into x's HBM buffer (x is arg 0).
        kwargs["input_output_aliases"] = {0: 0}

    # Advisory cost hint: pure streaming op, read x + tiny params, write out.
    x_bytes = NC * HW * itemsize
    cost = pl.CostEstimate(
        flops=2 * NC * HW,
        transcendentals=0,
        bytes_accessed=2 * x_bytes + 2 * NC * 4,
    )

    out2 = pl.pallas_call(
        _frozen_bn_kernel,
        out_shape=jax.ShapeDtypeStruct((NC, HW), x.dtype),
        grid=grid,
        in_specs=[x_spec, p_spec, p_spec],
        out_specs=x_spec,
        compiler_params=pltpu.CompilerParams(
            dimension_semantics=("parallel", "parallel"),
            vmem_limit_bytes=64 * 1024 * 1024,
        ),
        cost_estimate=cost,
        **kwargs,
    )(x2, scale2, bias2)

    return out2.reshape(N, C, H, W)


if __name__ == "__main__":
    key = jax.random.PRNGKey(0)
    kx, kw, kb, km, kv = jax.random.split(key, 5)

    N, C, H, W = 2, 4, 16, 16
    x = jax.random.normal(kx, (N, C, H, W), dtype=jnp.float32)

    # Deterministic "frozen" buffers: the module's __init__ uses ones/zeros;
    # perturb them deterministically so the test is non-trivial.
    weight = jnp.ones((C,), jnp.float32) + 0.1 * jax.random.normal(kw, (C,), jnp.float32)
    bias = jnp.zeros((C,), jnp.float32) + 0.1 * jax.random.normal(kb, (C,), jnp.float32)
    running_mean = 0.2 * jax.random.normal(km, (C,), jnp.float32)
    running_var = jnp.abs(jnp.ones((C,), jnp.float32)
                          + 0.1 * jax.random.normal(kv, (C,), jnp.float32))

    out = frozen_batchnorm2d(x, weight, bias, running_mean, running_var)
    out = jax.block_until_ready(out)

    # Pure-JAX reference (mirrors the PyTorch forward exactly).
    eps = 1e-05
    scale_r = (weight * lax.rsqrt(running_var + eps)).reshape(1, C, 1, 1)
    bias_r = bias.reshape(1, C, 1, 1) - running_mean.reshape(1, C, 1, 1) * scale_r
    ref = x * scale_r + bias_r

    assert out.shape == (N, C, H, W)
    assert out.dtype == x.dtype
    assert jnp.allclose(out, ref, atol=1e-5, rtol=1e-5), "mismatch vs reference"

    print("KERNEL_OK")
</pallas_src>

<mosaic_0001>
module attributes {stable_mosaic.version = 11 : i64} {
  func.func @_frozen_bn_kernel(%arg0: i32, %arg1: i32, %arg2: memref<8x256xf32, #tpu.memory_space<vmem>>, %arg3: memref<8x1xf32, #tpu.memory_space<vmem>>, %arg4: memref<8x1xf32, #tpu.memory_space<vmem>>, %arg5: memref<8x256xf32, #tpu.memory_space<vmem>>) attributes {dimension_semantics = [#tpu.dimension_semantics<parallel>, #tpu.dimension_semantics<parallel>], iteration_bounds = array<i64: 1, 1>, scalar_prefetch = 0 : i64, scratch_operands = 0 : i64, tpu.core_type = #tpu.core_type<tc>, window_params = [{transform_indices = @transform_0, window_bounds = array<i64: 8, 256>}, {transform_indices = @transform_1, window_bounds = array<i64: 8, 1>}, {transform_indices = @transform_2, window_bounds = array<i64: 8, 1>}, {transform_indices = @transform_3, window_bounds = array<i64: 8, 256>}]} {
    %c0 = arith.constant 0 : index
    %c0_0 = arith.constant 0 : index
    %0 = vector.load %arg2[%c0, %c0_0] : memref<8x256xf32, #tpu.memory_space<vmem>>, vector<8x256xf32>
    %c0_1 = arith.constant 0 : index
    %c0_2 = arith.constant 0 : index
    %1 = vector.load %arg3[%c0_1, %c0_2] : memref<8x1xf32, #tpu.memory_space<vmem>>, vector<8x1xf32>
    %2 = vector.broadcast %1 : vector<8x1xf32> to vector<8x256xf32>
    %3 = arith.mulf %0, %2 : vector<8x256xf32>
    %c0_3 = arith.constant 0 : index
    %c0_4 = arith.constant 0 : index
    %4 = vector.load %arg4[%c0_3, %c0_4] : memref<8x1xf32, #tpu.memory_space<vmem>>, vector<8x1xf32>
    %5 = vector.broadcast %4 : vector<8x1xf32> to vector<8x256xf32>
    %6 = arith.addf %3, %5 : vector<8x256xf32>
    %c0_5 = arith.constant 0 : index
    %c0_6 = arith.constant 0 : index
    %7 = vector.load %arg5[%c0_5, %c0_6] : memref<8x256xf32, #tpu.memory_space<vmem>>, vector<8x256xf32>
    tpu.vector_store %arg5[%c0_5, %c0_6], %6 {strides = array<i32>} : memref<8x256xf32, #tpu.memory_space<vmem>>, vector<8x256xf32>,
    return
  }
  func.func @transform_0(%arg0: i32, %arg1: i32) -> (i32, i32) {
    %c0_i32 = arith.constant 0 : i32
    return %arg0, %arg1 : i32, i32
  }
  func.func @transform_1(%arg0: i32, %arg1: i32) -> (i32, i32) {
    %c0_i32 = arith.constant 0 : i32
    %c0_i32_0 = arith.constant 0 : i32
    return %arg0, %c0_i32 : i32, i32
  }
  func.func @transform_2(%arg0: i32, %arg1: i32) -> (i32, i32) {
    %c0_i32 = arith.constant 0 : i32
    %c0_i32_0 = arith.constant 0 : i32
    return %arg0, %c0_i32 : i32, i32
  }
  func.func @transform_3(%arg0: i32, %arg1: i32) -> (i32, i32) {
    %c0_i32 = arith.constant 0 : i32
    return %arg0, %arg1 : i32, i32
  }
}

</mosaic_0001>

<bundles_post_ra>
// kernel: tpu_custom_call.1
= control target key start
LH: loop header
LB: loop body
LE: loop exit
PB: predicated region body
PF: predicated region fallthrough
CT: control target
= control target key end

     0   :  { %s117_s0 = inlined_call_operand.vmem [shape: f32[8,256], index: 0, kind: input, shape index: {}]   ;;  %s118_s1 = inlined_call_operand.vmem [shape: f32[8,1], index: 1, kind: input, shape index: {}]   ;;  %s119_s2 = inlined_call_operand.vmem [shape: f32[8,1], index: 2, kind: input, shape index: {}]   ;;  %s120_s3 = inlined_call_operand.hbm [shape: f32[8,256], index: 3, kind: output, shape index: {}]  }
   0x1   :  { %v17_v0 = vld [vmem:[%s118_s1] sm:$0xff] }
   0x2   :  { %8 = vsyncpa [#allocation3], 0  ;;  %v80_v1 = vmov 0   ;;  %v25_v2 = vld [vmem:[%s119_s2] sm:$0xff]  ;;  %v16_v5 = vld [vmem:[%s117_s0 + $0x8] sm:$0xff]  ;;  %s81_s1 = smov [#allocation2]  }
   0x3   :  { %53 = vset.pattern.permute.xlu0 %v80_v1  ;;  %v15_v4 = vld [vmem:[%s117_s0] sm:$0xff]  ;;  %s40_s20 = sshll.u32 %s81_s1, 4  ;;  %s42_s23 = sshll.u32 %s120_s3, 4  ;;  %s41_s20 = int_to_ptr.vmem [resolvable:$true] %s40_s20  ;;  %s43_s23 = int_to_ptr.hbm [resolvable:$true] %s42_s23 }
   0x4   :  { %20 = vperm.xlu0 %53, %v17_v0  }
   0xc   :  { %28 = vperm.xlu0 %53, %v25_v2  }
  0x76   :  { %v21_v3 = vpop.permute.xlu0 %20 }
  0x77   :  { %v23_v6 = vmul.f32 %v21_v3, %v15_v4  ;;  %v24_v7 = vmul.f32 %v21_v3, %v16_v5 }
  0x7e   :  { %v29_v8 = vpop.permute.xlu0 %28 }
  0x7f   :  { %v31_v9 = vadd.f32 %v29_v8, %v23_v6  ;;  %v32_v10 = vadd.f32 %v29_v8, %v24_v7 }
  0x81   :  { %33 = vst [vmem:[#allocation2] sm:$0xff] %v31_v9 }
  0x82   :  { %34 = vst [vmem:[#allocation2 + $0x8] sm:$0xff] %v32_v10 }
  0x83   :  { %45 = dma.vmem_to_hbm [thread:$0]  %s41_s20, 256, %s43_s23, [#allocation3]  }
  0x84   :  { %78 = dma.done.wait [#allocation3], 256  }
  0x85   :  { %79 = vsyncadd [#allocation3], 4294967040 }
  0x86   :  { %50 = vsyncpa [#allocation3], 1 }

</bundles_post_ra>
